<compile_context>
chip_gen: v5e
topology: v5e:2x2
jax: 0.10.0
libtpu: 0.0.40
codegen_flags: <defaults>
</compile_context>

<pallas_src>
import jax
import jax.numpy as jnp
from jax.experimental import pallas as pl
from jax.experimental.pallas import tpu as pltpu


def _round_up(x, m):
    return ((x + m - 1) // m) * m


def _cdiv(a, b):
    return -(-a // b)


def upsample_block_forward(x_nchw, weight, bias, alpha, up_scale, *, lane_tile=512):
    """x_nchw: (N,C,H,W) f32.  weight: (C*r^2, C, 3, 3).  bias: (C*r^2,).  alpha: scalar."""
    N, C, H, W = x_nchw.shape
    r = int(up_scale)
    O = weight.shape[0]
    assert O == C * r * r, (O, C, r)

    W2 = W + 2                               # padded width
    L_valid = H * W2                         # flat range containing every valid conv output
    max_off = 2 * W2 + 2                     # largest tap lane offset (kh=kw=2)
    C8 = _round_up(C, 16)                    # channel pad -> aligned packed-bf16 sublane tiles

    # Lane tile (multiple of 128).  Must cover the tap halo so tap slices of the
    # stitched [cur|next] window stay inside 2*TL.
    TL = min(int(lane_tile), _round_up(L_valid, 128))
    TL = max(TL, _round_up(max_off, 128))
    num_tiles = _cdiv(L_valid, TL)
    L_out = num_tiles * TL
    P_in = (num_tiles + 1) * TL              # one extra zero tile so the "next" block always exists

    # ---- input: cast -> single pad (channels + 3x3 halo + trailing zero rows) -> flatten ----
    extra_rows = _cdiv(P_in - (H + 2) * W2, W2)
    xp = jnp.pad(x_nchw.astype(jnp.bfloat16),
                 ((0, 0), (0, C8 - C), (1, 1 + extra_rows), (1, 1)))
    xf = xp.reshape(N, C8, (H + 2 + extra_rows) * W2)[:, :, :P_in]     # (N, C8, P_in) bf16

    # ---- weights: (O, C, 3, 3) -> (O, 9*C8), column order (kh, kw, c) ----
    w9 = jnp.transpose(weight, (0, 2, 3, 1))                           # (O, 3, 3, C)
    w9 = jnp.pad(w9, ((0, 0), (0, 0), (0, 0), (0, C8 - C)))            # zero cols for padded channels
    wcat = w9.reshape(O, 9 * C8).astype(jnp.bfloat16)                  # (O, 9*C8)
    bcol = bias.astype(jnp.float32).reshape(O, 1)
    avec = jnp.asarray(alpha, jnp.float32).reshape(1)                  # SMEM scalar

    def kernel(xc_ref, xn_ref, w_ref, b_ref, a_ref, o_ref, xwin_ref, slab_ref):
        # xc_ref/xn_ref: (C8, TL) bf16   current / next lane tile of the padded image
        # w_ref:         (O, 9*C8) bf16  fused per-tap weights
        # b_ref:         (O, 1) f32      bias
        # a_ref:         (1,)  f32       PReLU alpha (SMEM)
        # o_ref:         (O, TL) bf16    conv output tile (incl. junk pad columns)
        # xwin_ref:      (C8, 2*TL) bf16 scratch: stitched window (aligned stores)
        # slab_ref:      (9*C8, TL) bf16 scratch: implicit-im2col patch slab
        xwin_ref[:, :TL] = xc_ref[...]
        xwin_ref[:, TL:] = xn_ref[...]
        # Build the patch slab once per tile: 9 static lane-shifted copies.
        for kh in range(3):
            for kw in range(3):
                t = kh * 3 + kw
                off = kh * W2 + kw                       # static, <= max_off <= TL
                slab_ref[t * C8:(t + 1) * C8, :] = xwin_ref[:, off:off + TL]
        # One large-K MXU matmul, f32 accumulation; bias + PReLU epilogue; bf16 store.
        acc = jnp.dot(w_ref[...], slab_ref[...], preferred_element_type=jnp.float32)
        acc = acc + b_ref[...]
        a = a_ref[0]
        o_ref[...] = jnp.where(acc >= 0.0, acc, a * acc).astype(o_ref.dtype)

    flops = 2 * N * O * 9 * C * H * W
    bytes_accessed = (2 * N * C8 * P_in * 2          # image fetched as "cur" and "next" (bf16)
                      + O * 9 * C8 * 2 + O * 4 + 4   # weights + bias + alpha
                      + N * O * L_out * 2)           # bf16 output

    yflat = pl.pallas_call(
        kernel,
        out_shape=jax.ShapeDtypeStruct((N, O, L_out), jnp.bfloat16),
        grid_spec=pltpu.PrefetchScalarGridSpec(
            num_scalar_prefetch=0,
            grid=(N, num_tiles),
            in_specs=[
                pl.BlockSpec((None, C8, TL), lambda n, j: (n, 0, j)),       # current lane tile
                pl.BlockSpec((None, C8, TL), lambda n, j: (n, 0, j + 1)),   # next lane tile (halo)
                pl.BlockSpec((O, 9 * C8), lambda n, j: (0, 0)),             # weights, VMEM-resident
                pl.BlockSpec((O, 1), lambda n, j: (0, 0)),                  # bias
                pl.BlockSpec(memory_space=pltpu.MemorySpace.SMEM),          # alpha scalar
            ],
            out_specs=pl.BlockSpec((None, O, TL), lambda n, j: (n, 0, j)),
            scratch_shapes=[
                pltpu.VMEM((C8, 2 * TL), jnp.bfloat16),     # stitched window
                pltpu.VMEM((9 * C8, TL), jnp.bfloat16),     # patch slab
            ],
        ),
        compiler_params=pltpu.CompilerParams(
            dimension_semantics=("parallel", "parallel"),
        ),
        cost_estimate=pl.CostEstimate(flops=flops, transcendentals=0,
                                      bytes_accessed=bytes_accessed),
    )(xf, xf, wcat, bcol, avec)                                           # (N, O, L_out) bf16

    # ---- wrapper glue on the output: trim junk columns + pixel shuffle -> NCHW f32 ----
    # valid conv output lives at flat index h*W2 + w for w < W, h < H
    y = yflat[:, :, :H * W2].reshape(N, O, H, W2)[:, :, :, :W]            # (N, O, H, W)
    y = y.reshape(N, C, r, r, H, W)                                       # o = c*r*r + i*r + j
    y = jnp.transpose(y, (0, 1, 4, 2, 5, 3))                              # (N, C, H, r, W, r)
    y = y.reshape(N, C, H * r, W * r)
    return y.astype(jnp.float32)


def reference_forward(x, weight, bias, alpha, r):
    """Pure-JAX f32 reference matching the PyTorch module (conv -> shuffle -> prelu)."""
    y = jax.lax.conv_general_dilated(
        x, weight, window_strides=(1, 1), padding=((1, 1), (1, 1)),
        dimension_numbers=("NCHW", "OIHW", "NCHW"))
    y = y + bias[None, :, None, None]
    N, O, H, W = y.shape
    C = O // (r * r)
    y = y.reshape(N, C, r, r, H, W).transpose(0, 1, 4, 2, 5, 3).reshape(N, C, H * r, W * r)
    a = jnp.asarray(alpha, jnp.float32)
    return jnp.where(y > 0, y, a * y)


def init_params(key, in_channels, up_scale):
    """Deterministic synthetic parameters matching nn.Conv2d / nn.PReLU shapes."""
    out_channels = in_channels * up_scale ** 2
    k_w, k_b = jax.random.split(key)
    fan_in = in_channels * 3 * 3
    bound = 1.0 / (fan_in ** 0.5)
    weight = jax.random.uniform(
        k_w, (out_channels, in_channels, 3, 3), jnp.float32, -bound, bound)
    bias = jax.random.uniform(
        k_b, (out_channels,), jnp.float32, -bound, bound)
    alpha = jnp.float32(0.25)  # nn.PReLU() default: single shared parameter = 0.25
    return weight, bias, alpha


if __name__ == "__main__":
    key = jax.random.PRNGKey(0)
    k_x, k_p = jax.random.split(key)

    N, C, H, W = 2, 4, 16, 16
    up_scale = 2

    x = jax.random.normal(k_x, (N, C, H, W), jnp.float32)
    weight, bias, alpha = init_params(k_p, C, up_scale)

    fwd = jax.jit(upsample_block_forward, static_argnums=(4,))
    y = fwd(x, weight, bias, alpha, up_scale)
    y = jax.block_until_ready(y)

    expected_shape = (N, C, H * up_scale, W * up_scale)
    assert y.shape == expected_shape, (y.shape, expected_shape)

    ref = reference_forward(x, weight, bias, alpha, up_scale)
    max_err = float(jnp.max(jnp.abs(y - ref)))
    assert jnp.allclose(y, ref, rtol=2e-2, atol=1e-1), f"max abs err {max_err}"

    print("KERNEL_OK")
</pallas_src>

<mosaic_0001>
module attributes {stable_mosaic.version = 11 : i64} {
  func.func @kernel(%arg0: i32, %arg1: i32, %arg2: memref<1x16x384xbf16, #tpu.memory_space<vmem>>, %arg3: memref<1x16x384xbf16, #tpu.memory_space<vmem>>, %arg4: memref<16x144xbf16, #tpu.memory_space<vmem>>, %arg5: memref<16x1xf32, #tpu.memory_space<vmem>>, %arg6: memref<1xf32, #tpu.memory_space<smem>>, %arg7: memref<1x16x384xbf16, #tpu.memory_space<vmem>>, %arg8: memref<16x768xbf16, #tpu.memory_space<vmem>>, %arg9: memref<144x384xbf16, #tpu.memory_space<vmem>>) attributes {dimension_semantics = [#tpu.dimension_semantics<parallel>, #tpu.dimension_semantics<parallel>], iteration_bounds = array<i64: 2, 1>, scalar_prefetch = 0 : i64, scratch_operands = 2 : i64, tpu.core_type = #tpu.core_type<tc>, window_params = [{transform_indices = @transform_0, window_bounds = array<i64: 1, 16, 384>}, {transform_indices = @transform_1, window_bounds = array<i64: 1, 16, 384>}, {pipeline_mode = #tpu.pipeline_mode<synchronous>, transform_indices = @transform_2, window_bounds = array<i64: 16, 144>}, {pipeline_mode = #tpu.pipeline_mode<synchronous>, transform_indices = @transform_3, window_bounds = array<i64: 16, 1>}, {transform_indices = @transform_4, window_bounds = array<i64: 1>}, {transform_indices = @transform_5, window_bounds = array<i64: 1, 16, 384>}]} {
    %c0 = arith.constant 0 : index
    %c0_0 = arith.constant 0 : index
    %c0_1 = arith.constant 0 : index
    %0 = vector.load %arg2[%c0, %c0_0, %c0_1] : memref<1x16x384xbf16, #tpu.memory_space<vmem>>, vector<1x16x384xbf16>
    %1 = vector.shape_cast %0 : vector<1x16x384xbf16> to vector<16x384xbf16>
    %c0_2 = arith.constant 0 : index
    %c0_3 = arith.constant 0 : index
    %2 = vector.load %arg8[%c0_2, %c0_3] : memref<16x768xbf16, #tpu.memory_space<vmem>>, vector<16x384xbf16>
    tpu.vector_store %arg8[%c0_2, %c0_3], %1 {strides = array<i32>} : memref<16x768xbf16, #tpu.memory_space<vmem>>, vector<16x384xbf16>,
    %c0_4 = arith.constant 0 : index
    %c0_5 = arith.constant 0 : index
    %c0_6 = arith.constant 0 : index
    %3 = vector.load %arg3[%c0_4, %c0_5, %c0_6] : memref<1x16x384xbf16, #tpu.memory_space<vmem>>, vector<1x16x384xbf16>
    %4 = vector.shape_cast %3 : vector<1x16x384xbf16> to vector<16x384xbf16>
    %c0_7 = arith.constant 0 : index
    %c384 = arith.constant 384 : index
    %5 = vector.load %arg8[%c0_7, %c384] : memref<16x768xbf16, #tpu.memory_space<vmem>>, vector<16x384xbf16>
    tpu.vector_store %arg8[%c0_7, %c384], %4 {strides = array<i32>} : memref<16x768xbf16, #tpu.memory_space<vmem>>, vector<16x384xbf16>,
    %c0_8 = arith.constant 0 : index
    %c0_9 = arith.constant 0 : index
    %6 = vector.load %arg8[%c0_8, %c0_9] : memref<16x768xbf16, #tpu.memory_space<vmem>>, vector<16x384xbf16>
    %c0_10 = arith.constant 0 : index
    %c0_11 = arith.constant 0 : index
    %7 = vector.load %arg9[%c0_10, %c0_11] : memref<144x384xbf16, #tpu.memory_space<vmem>>, vector<16x384xbf16>
    tpu.vector_store %arg9[%c0_10, %c0_11], %6 {strides = array<i32>} : memref<144x384xbf16, #tpu.memory_space<vmem>>, vector<16x384xbf16>,
    %c0_12 = arith.constant 0 : index
    %c1 = arith.constant 1 : index
    %8 = vector.load %arg8[%c0_12, %c1] : memref<16x768xbf16, #tpu.memory_space<vmem>>, vector<16x384xbf16>
    %c16 = arith.constant 16 : index
    %c0_13 = arith.constant 0 : index
    %9 = vector.load %arg9[%c16, %c0_13] : memref<144x384xbf16, #tpu.memory_space<vmem>>, vector<16x384xbf16>
    tpu.vector_store %arg9[%c16, %c0_13], %8 {strides = array<i32>} : memref<144x384xbf16, #tpu.memory_space<vmem>>, vector<16x384xbf16>,
    %c0_14 = arith.constant 0 : index
    %c2 = arith.constant 2 : index
    %10 = vector.load %arg8[%c0_14, %c2] : memref<16x768xbf16, #tpu.memory_space<vmem>>, vector<16x384xbf16>
    %c32 = arith.constant 32 : index
    %c0_15 = arith.constant 0 : index
    %11 = vector.load %arg9[%c32, %c0_15] : memref<144x384xbf16, #tpu.memory_space<vmem>>, vector<16x384xbf16>
    tpu.vector_store %arg9[%c32, %c0_15], %10 {strides = array<i32>} : memref<144x384xbf16, #tpu.memory_space<vmem>>, vector<16x384xbf16>,
    %c0_16 = arith.constant 0 : index
    %c18 = arith.constant 18 : index
    %12 = vector.load %arg8[%c0_16, %c18] : memref<16x768xbf16, #tpu.memory_space<vmem>>, vector<16x384xbf16>
    %c48 = arith.constant 48 : index
    %c0_17 = arith.constant 0 : index
    %13 = vector.load %arg9[%c48, %c0_17] : memref<144x384xbf16, #tpu.memory_space<vmem>>, vector<16x384xbf16>
    tpu.vector_store %arg9[%c48, %c0_17], %12 {strides = array<i32>} : memref<144x384xbf16, #tpu.memory_space<vmem>>, vector<16x384xbf16>,
    %c0_18 = arith.constant 0 : index
    %c19 = arith.constant 19 : index
    %14 = vector.load %arg8[%c0_18, %c19] : memref<16x768xbf16, #tpu.memory_space<vmem>>, vector<16x384xbf16>
    %c64 = arith.constant 64 : index
    %c0_19 = arith.constant 0 : index
    %15 = vector.load %arg9[%c64, %c0_19] : memref<144x384xbf16, #tpu.memory_space<vmem>>, vector<16x384xbf16>
    tpu.vector_store %arg9[%c64, %c0_19], %14 {strides = array<i32>} : memref<144x384xbf16, #tpu.memory_space<vmem>>, vector<16x384xbf16>,
    %c0_20 = arith.constant 0 : index
    %c20 = arith.constant 20 : index
    %16 = vector.load %arg8[%c0_20, %c20] : memref<16x768xbf16, #tpu.memory_space<vmem>>, vector<16x384xbf16>
    %c80 = arith.constant 80 : index
    %c0_21 = arith.constant 0 : index
    %17 = vector.load %arg9[%c80, %c0_21] : memref<144x384xbf16, #tpu.memory_space<vmem>>, vector<16x384xbf16>
    tpu.vector_store %arg9[%c80, %c0_21], %16 {strides = array<i32>} : memref<144x384xbf16, #tpu.memory_space<vmem>>, vector<16x384xbf16>,
    %c0_22 = arith.constant 0 : index
    %c36 = arith.constant 36 : index
    %18 = vector.load %arg8[%c0_22, %c36] : memref<16x768xbf16, #tpu.memory_space<vmem>>, vector<16x384xbf16>
    %c96 = arith.constant 96 : index
    %c0_23 = arith.constant 0 : index
    %19 = vector.load %arg9[%c96, %c0_23] : memref<144x384xbf16, #tpu.memory_space<vmem>>, vector<16x384xbf16>
    tpu.vector_store %arg9[%c96, %c0_23], %18 {strides = array<i32>} : memref<144x384xbf16, #tpu.memory_space<vmem>>, vector<16x384xbf16>,
    %c0_24 = arith.constant 0 : index
    %c37 = arith.constant 37 : index
    %20 = vector.load %arg8[%c0_24, %c37] : memref<16x768xbf16, #tpu.memory_space<vmem>>, vector<16x384xbf16>
    %c112 = arith.constant 112 : index
    %c0_25 = arith.constant 0 : index
    %21 = vector.load %arg9[%c112, %c0_25] : memref<144x384xbf16, #tpu.memory_space<vmem>>, vector<16x384xbf16>
    tpu.vector_store %arg9[%c112, %c0_25], %20 {strides = array<i32>} : memref<144x384xbf16, #tpu.memory_space<vmem>>, vector<16x384xbf16>,
    %c0_26 = arith.constant 0 : index
    %c38 = arith.constant 38 : index
    %22 = vector.load %arg8[%c0_26, %c38] : memref<16x768xbf16, #tpu.memory_space<vmem>>, vector<16x384xbf16>
    %c128 = arith.constant 128 : index
    %c0_27 = arith.constant 0 : index
    %23 = vector.load %arg9[%c128, %c0_27] : memref<144x384xbf16, #tpu.memory_space<vmem>>, vector<16x384xbf16>
    tpu.vector_store %arg9[%c128, %c0_27], %22 {strides = array<i32>} : memref<144x384xbf16, #tpu.memory_space<vmem>>, vector<16x384xbf16>,
    %c0_28 = arith.constant 0 : index
    %c0_29 = arith.constant 0 : index
    %24 = vector.load %arg4[%c0_28, %c0_29] : memref<16x144xbf16, #tpu.memory_space<vmem>>, vector<16x144xbf16>
    %c0_30 = arith.constant 0 : index
    %c0_31 = arith.constant 0 : index
    %25 = vector.load %arg9[%c0_30, %c0_31] : memref<144x384xbf16, #tpu.memory_space<vmem>>, vector<144x384xbf16>
    %cst = arith.constant dense<0.000000e+00> : vector<16x384xf32>
    %26 = tpu.matmul %24, %25, %cst {dimension_numbers = #tpu.dot_dimension_numbers<[1], [0], [0], [1], [0, 0, 1, 1], [], []>} : vector<16x144xbf16>, vector<144x384xbf16>, vector<16x384xf32> -> vector<16x384xf32>
    %c0_32 = arith.constant 0 : index
    %c0_33 = arith.constant 0 : index
    %27 = vector.load %arg5[%c0_32, %c0_33] : memref<16x1xf32, #tpu.memory_space<vmem>>, vector<16x1xf32>
    %28 = vector.broadcast %27 : vector<16x1xf32> to vector<16x384xf32>
    %29 = arith.addf %26, %28 : vector<16x384xf32>
    %c0_34 = arith.constant 0 : index
    %30 = memref.load %arg6[%c0_34] : memref<1xf32, #tpu.memory_space<smem>>
    %cst_35 = arith.constant 0.000000e+00 : f32
    %31 = vector.broadcast %cst_35 : f32 to vector<16x384xf32>
    %32 = arith.cmpf oge, %29, %31 : vector<16x384xf32>
    %33 = vector.broadcast %30 : f32 to vector<16x384xf32>
    %34 = arith.mulf %33, %29 : vector<16x384xf32>
    %35 = arith.select %32, %29, %34 : vector<16x384xi1>, vector<16x384xf32>
    %36 = arith.truncf %35 : vector<16x384xf32> to vector<16x384xbf16>
    %c0_36 = arith.constant 0 : index
    %c0_37 = arith.constant 0 : index
    %c0_38 = arith.constant 0 : index
    %37 = vector.load %arg7[%c0_36, %c0_37, %c0_38] : memref<1x16x384xbf16, #tpu.memory_space<vmem>>, vector<1x16x384xbf16>
    %38 = vector.shape_cast %37 : vector<1x16x384xbf16> to vector<16x384xbf16>
    %39 = vector.shape_cast %36 : vector<16x384xbf16> to vector<1x16x384xbf16>
    tpu.vector_store %arg7[%c0_36, %c0_37, %c0_38], %39 {strides = array<i32>} : memref<1x16x384xbf16, #tpu.memory_space<vmem>>, vector<1x16x384xbf16>,
    return
  }
  func.func @transform_0(%arg0: i32, %arg1: i32) -> (i32, i32, i32) {
    %c0_i32 = arith.constant 0 : i32
    %c0_i32_0 = arith.constant 0 : i32
    return %arg0, %c0_i32, %arg1 : i32, i32, i32
  }
  func.func @transform_1(%arg0: i32, %arg1: i32) -> (i32, i32, i32) {
    %c1_i32 = arith.constant 1 : i32
    %0 = arith.addi %arg1, %c1_i32 : i32
    %c0_i32 = arith.constant 0 : i32
    %c0_i32_0 = arith.constant 0 : i32
    return %arg0, %c0_i32, %0 : i32, i32, i32
  }
  func.func @transform_2(%arg0: i32, %arg1: i32) -> (i32, i32) {
    %c0_i32 = arith.constant 0 : i32
    %c0_i32_0 = arith.constant 0 : i32
    %c0_i32_1 = arith.constant 0 : i32
    return %c0_i32, %c0_i32_0 : i32, i32
  }
  func.func @transform_3(%arg0: i32, %arg1: i32) -> (i32, i32) {
    %c0_i32 = arith.constant 0 : i32
    %c0_i32_0 = arith.constant 0 : i32
    %c0_i32_1 = arith.constant 0 : i32
    return %c0_i32, %c0_i32_0 : i32, i32
  }
  func.func @transform_4(%arg0: i32, %arg1: i32) -> i32 {
    %c0_i32 = arith.constant 0 : i32
    %c0_i32_0 = arith.constant 0 : i32
    return %c0_i32 : i32
  }
  func.func @transform_5(%arg0: i32, %arg1: i32) -> (i32, i32, i32) {
    %c0_i32 = arith.constant 0 : i32
    %c0_i32_0 = arith.constant 0 : i32
    return %arg0, %c0_i32, %arg1 : i32, i32, i32
  }
}

</mosaic_0001>

<bundles_post_ra>
// kernel: upsample_block_forward.1
= control target key start
LH: loop header
LB: loop body
LE: loop exit
PB: predicated region body
PF: predicated region fallthrough
CT: control target
= control target key end

     0   :  { %s1590_s0 = inlined_call_operand.vmem [shape: bf16[2,16,768], index: 0, kind: input, shape index: {}, may-alias: {0,1}]   ;;  %s1591_s1 = inlined_call_operand.vmem [shape: bf16[2,16,768], index: 1, kind: input, shape index: {}, may-alias: {0,1}]   ;;  %s1592_s2 = inlined_call_operand.vmem [shape: bf16[16,144], index: 2, kind: input, shape index: {}]   ;;  %s1593_s3 = inlined_call_operand.vmem [shape: f32[16,1], index: 3, kind: input, shape index: {}]   ;;  %s1594_s4 = inlined_call_operand.<no memory space> [shape: f32[1], index: 4, kind: input, shape index: {}]   ;;  %s1595_s5 = inlined_call_operand.vmem [shape: bf16[2,16,384], index: 5, kind: output, shape index: {}]  }
   0x1   :  { %10 = sst [smem:[#allocation4]] %s1594_s4 }
   0x2   :  { %s1407_s20 = smov 0   ;;  %s1409_s21 = smov 0  }
   0x3   :  { %s1411_s22 = smov 0   ;;  %s1413_s23 = smov 0  }
   0x4   :  { %s1415_s24 = smov 0  }
   0x5 LB: > { %s28_s4 = sadd.s32 1, %s1359_s23  ;;  %p44_p1 = scmp.ne.s32.totalorder %s1351_s21, %s1347_s20  ;;  %s1363_s24 = sphi %s1415_s24, %s16_s24   ;;  %s1359_s23 = sphi %s1413_s23, %s1600_s23   ;;  %s1355_s22 = sphi %s1411_s22, %s1599_s22   ;;  %s1351_s21 = sphi %s1409_s21, %s1598_s21   ;;  %s1347_s20 = sphi %s1407_s20, %s1597_s20  }
   0x6   : > { %p30_p0 = scmp.ge.s32.totalorder %s28_s4, 2  ;;  %p45_p2 = scmp.eq.s32.totalorder %s1363_s24, 0 }
   0x7   : > { %s37_s27 = sadd.s32 1, %s1351_s21  ;;  %p1104_p5 = scmp.ge.s32.totalorder %s1363_s24, 2 }
   0x8   : > { %s1602_s4 = smov (%p30_p0, %s28_s4), 0  ;;  %p1438_p3 = por %p45_p2, %p44_p1 }
   0x9   : > { %s32_s26 = ssub.s32 %s1359_s23, %s1602_s4  ;;  %200 = sbr.rel (%p1104_p5) target bundleno = 32 (0x20), region = 28 }
   0xa   : > { %p35_p4 = scmp.eq.s32.totalorder %s32_s26, 0 }
   0xc   : > { %s1446_s28 = scalar_select %p35_p4, %s1351_s21, %s37_s27  }
   0xe   : > { %203 = sbr.rel (!%p1438_p3) target bundleno = 23 (0x17), region = 32  ;;  %s205_s29 = sand.u32 (%p1438_p3), 1, %s1351_s21  }
   0xf   : > { %s1270_s30 = smul.u32 (%p1438_p3), 48, %s1359_s23 }
  0x10   : > { %s1269_s6 = smul.u32 (%p1438_p3), 24, %s205_s29 }
  0x11   : > { %s212_s9 = scalar_lea.vmem (%p1438_p3), %s1590_s0, %s1270_s30 }
  0x12   : > { %v227_v0 = vld [vmem:[%s212_s9] sm:$0xff] (%p1438_p3)  ;;  %v229_v1 = vld [vmem:[%s212_s9 + $0x18] sm:$0xff] (%p1438_p3)  ;;  %v1106_v2 = vld [vmem:[%s212_s9 + $0x8] sm:$0xf] (%p1438_p3)  ;;  %s207_s10 = scalar_lea.vmem (%p1438_p3), [#allocation5], %s1269_s6 }
  0x13   : > { %228 = vst [vmem:[%s207_s10] sm:$0xff] %v227_v0  ;;  %v1108_v3 = vld [vmem:[%s212_s9 + $0x20] sm:$0xf] }
  0x14   : > { %230 = vst [vmem:[%s207_s10 + $0xc] sm:$0xff] %v229_v1 }
  0x15   : > { %1107 = vst [vmem:[%s207_s10 + $0x8] sm:$0xf] %v1106_v2 }
  0x16   : > { %1109 = vst [vmem:[%s207_s10 + $0x14] sm:$0xf] %v1108_v3 }
  0x17 PF: > { %248 = sbr.rel (!%p1438_p3) target bundleno = 32 (0x20), region = 58  ;;  %s250_s11 = sand.u32 (%p1438_p3), 1, %s1351_s21  }
  0x18   : > { %s1110_s12 = smul.u32 (%p1438_p3), 48, %s1359_s23 }
  0x19   : > { %s1271_s13 = smul.u32 (%p1438_p3), 24, %s250_s11 }
  0x1a   : > { %s1023_s16 = scalar_lea.vmem (%p1438_p3), %s1591_s1, %s1110_s12 }
  0x1b   : > { %v1111_v4 = vld [vmem:[%s1023_s16 + $0xc] sm:$0xff] (%p1438_p3)  ;;  %v1112_v5 = vld [vmem:[%s1023_s16 + $0x24] sm:$0xff] (%p1438_p3)  ;;  %v1113_v6 = vld [vmem:[%s1023_s16 + $0x14] sm:$0xf] (%p1438_p3)  ;;  %s252_s17 = scalar_lea.vmem (%p1438_p3), [#allocation6], %s1271_s13 }
  0x1c   : > { %274 = vst [vmem:[%s252_s17] sm:$0xff] %v1111_v4  ;;  %v1115_v7 = vld [vmem:[%s1023_s16 + $0x2c] sm:$0xf] }
  0x1d   : > { %276 = vst [vmem:[%s252_s17 + $0xc] sm:$0xff] %v1112_v5 }
  0x1e   : > { %1114 = vst [vmem:[%s252_s17 + $0x8] sm:$0xf] %v1113_v6 }
  0x1f   : > { %1116 = vst [vmem:[%s252_s17 + $0x14] sm:$0xf] %v1115_v7 }
  0x20 PF: > { %p1117_p6 = scmp.ge.s32.totalorder %s1363_s24, 1  ;;  %p293_p7 = scmp.lt.s32.totalorder %s1363_s24, 3 }
  0x22   : > { %p294_p8 = pnand %p1117_p6, %p293_p7 }
  0x23   : > { %s300_s18 = sand.u32 (!%p294_p8), 1, %s1347_s20   ;;  %s1365_s26 = smov (!%p294_p8), 91  }
  0x24   : > { %297 = sbr.rel (%p294_p8) target bundleno = 411 (0x19b), region = 84  ;;  %s1366_s29 = smov (!%p294_p8), 92  }
  0x25   : > { %s1272_s19 = smul.u32 (!%p294_p8), 24, %s300_s18  ;;  %s1367_s20 = smov (!%p294_p8), 108  }
  0x26   : > { %s1368_s30 = smov (!%p294_p8), 109   ;;  %s1369_s6 = smov (!%p294_p8), 90  }
  0x27   : > { %s302_s25 = scalar_lea.vmem (!%p294_p8), [#allocation5], %s1272_s19  ;;  %s309_s27 = scalar_lea.vmem (!%p294_p8), [#allocation6], %s1272_s19 }
  0x28   : > { %s1370_s7 = smov (!%p294_p8), 110   ;;  %s1371_s8 = smov (!%p294_p8), 126  }
  0x29   : > { %v358_v8 = vld [vmem:[%s302_s25 + $0xc] sm:$0xff]  ;;  %v356_v9 = vld [vmem:[%s302_s25] sm:$0xff]  ;;  %v359_v10 = vld [vmem:[%s302_s25 + $0x14] sm:$0xf]  ;;  %s1372_s9 = smov 127   ;;  %vm400_vm0 = vcmask 1043456  }
  0x2a   : > { %603 = vrot.lane.b32.xlu1 %v358_v8, %s1365_s26  ;;  %599 = vrot.lane.b32.xlu0 %v356_v9, %s1365_s26  ;;  %v366_v11 = vld [vmem:[%s309_s27 + $0xc] sm:$0xff]  ;;  %363 = vst [vmem:[#allocation2 + $0x20] sm:$0xf] %v359_v10  ;;  %v357_v12 = vld [vmem:[%s302_s25 + $0x8] sm:$0xf]  ;;  %vm577_vm1 = vcmask 752640  }
  0x2b   : > { %564 = vrot.lane.b32.xlu2 %v356_v9, %s1366_s29  ;;  %370 = vst [vmem:[#allocation2 + $0x24] sm:$0xff] %v366_v11  ;;  %v364_v13 = vld [vmem:[%s309_s27] sm:$0xff]  ;;  %vm542_vm2 = vcmask 883712   ;;  %vm612_vm3 = vcmask 744448   ;;  %vm647_vm4 = vcmask 736256   ;;  %vm507_vm5 = vcmask 891904  }
  0x2c   : > { %361 = vst [vmem:[#allocation2 + $0x8] sm:$0xf] %v357_v12  ;;  %vm472_vm6 = vcmask 900096   ;;  %vm402_vm7 = vcmask 1039360   ;;  %vm437_vm8 = vcmask 1031168   ;;  %vm864_vm9 = vcmask 130048  }
  0x2d   : > { %368 = vst [vmem:[#allocation2 + $0xc] sm:$0xff] %v364_v13  ;;  %p346_p9 = scmp.lt.s32.totalorder %s1355_s22, 1  ;;  %s952_s27 = sld [smem:[#allocation4]] }
  0x2e   : > { %376 = vst [vmem:[#allocation3] sm:$0xff] %v356_v9 }
  0x2f   : > { %378 = vst [vmem:[#allocation3 + $0xc] sm:$0xff] %v358_v8  ;;  %s1604_s22 = smov (!%p346_p9, %s1355_s22), 1 }
  0x32   : > { %v594_v14 = vld [vmem:[#allocation2 + $0x20] sm:$0xff] }
  0x33   : > { %605 = vrot.lane.b32.xlu1 %v594_v14, %s1365_s26 }
  0x34   : > { %v592_v15 = vld [vmem:[#allocation2 + $0x8] sm:$0xff] }
  0x35   : > { %601 = vrot.lane.b32.xlu0 %v592_v15, %s1365_s26  ;;  %566 = vrot.lane.b32.xlu2 %v592_v15, %s1366_s29 }
  0x3b   : > { %570 = vrot.lane.b32.xlu1 %v594_v14, %s1366_s29 }
  0x3d   : > { %568 = vrot.lane.b32.xlu0 %v358_v8, %s1366_s29  ;;  %529 = vrot.lane.b32.xlu2 %v356_v9, %s1367_s20  ;;  %s1273_s29 = smul.u32 24, %s1604_s22 }
  0x43   : > { %533 = vrot.lane.b32.xlu1 %v358_v8, %s1367_s20 }
  0x45   : > { %531 = vrot.lane.b32.xlu0 %v592_v15, %s1367_s20  ;;  %535 = vrot.lane.b32.xlu2 %v594_v14, %s1367_s20 }
  0x4b   : > { %496 = vrot.lane.b32.xlu1 %v592_v15, %s1368_s30 }
  0x4d   : > { %494 = vrot.lane.b32.xlu0 %v356_v9, %s1368_s30  ;;  %498 = vrot.lane.b32.xlu2 %v358_v8, %s1368_s30 }
  0x53   : > { %634 = vrot.lane.b32.xlu1 %v356_v9, %s1369_s6 }
  0x55   : > { %500 = vrot.lane.b32.xlu0 %v594_v14, %s1368_s30  ;;  %636 = vrot.lane.b32.xlu2 %v592_v15, %s1369_s6 }
  0x5b   : > { %640 = vrot.lane.b32.xlu1 %v594_v14, %s1369_s6 }
  0x5d   : > { %638 = vrot.lane.b32.xlu0 %v358_v8, %s1369_s6  ;;  %459 = vrot.lane.b32.xlu2 %v356_v9, %s1370_s7  ;;  %s1569_s6 = scalar_lea.vmem %s1595_s5, %s1273_s29 }
  0x63   : > { %463 = vrot.lane.b32.xlu1 %v358_v8, %s1370_s7 }
  0x65   : > { %461 = vrot.lane.b32.xlu0 %v592_v15, %s1370_s7  ;;  %465 = vrot.lane.b32.xlu2 %v594_v14, %s1370_s7 }
  0x6b   : > { %426 = vrot.lane.b32.xlu1 %v592_v15, %s1371_s8 }
  0x6d   : > { %424 = vrot.lane.b32.xlu0 %v356_v9, %s1371_s8  ;;  %428 = vrot.lane.b32.xlu2 %v358_v8, %s1371_s8 }
  0x73   : > { %388 = vrot.lane.b32.xlu1 %v356_v9, %s1372_s9 }
  0x75   : > { %430 = vrot.lane.b32.xlu0 %v594_v14, %s1371_s8  ;;  %390 = vrot.lane.b32.xlu2 %v592_v15, %s1372_s9 }
  0x7b   : > { %394 = vrot.lane.b32.xlu1 %v594_v14, %s1372_s9 }
  0x7d   : > { %392 = vrot.lane.b32.xlu0 %v358_v8, %s1372_s9 }
  0x85   : > { %v565_v16 = vpop.permute.xlu2 %564 }
  0x86   : > { %v572_v17 = vrot.slane %v565_v16, 4 }
  0x8f   : > { %v567_v18 = vpop.permute.xlu2 %566 }
  0x90   : > { %v573_v19 = vrot.slane %v567_v18, 4 }
  0x92   : > { %v576_v20 = vsel %vm400_vm0, %v572_v17, %v573_v19  ;;  %v579_v21 = vsel %vm577_vm1, %v567_v18, %v573_v19 }
  0x93   : > { %v578_v22 = vsel %vm577_vm1, %v565_v16, %v576_v20  ;;  %588 = vst [vmem:[#allocation3 + $0x98] sm:$0xf] %v579_v21 }
  0x94   : > { %587 = vst [vmem:[#allocation3 + $0x90] sm:$0xff] %v578_v22 }
  0x97   : > { %v530_v23 = vpop.permute.xlu2 %529 }
  0x98   : > { %v537_v60 = vrot.slane %v530_v23, 4 }
  0x9b   : > { %v1201_v4 = vld [vmem:[#allocation3 + $0x90] sm:$0xf]  ;;  %v1260_v5 = vld [vmem:[#allocation3 + $0x94] sm:$0xf] }
  0x9c   : > { %v604_v24 = vpop.permute.xlu1 %603  ;;  %v600_v25 = vpop.permute.xlu0 %599 }
  0x9d   : > { %v609_v30 = vrot.slane %v604_v24, 4  ;;  %v607_v36 = vrot.slane %v600_v25, 4 }
  0x9f   : > { %v536_v26 = vpop.permute.xlu2 %535 }
  0xa0   : > { %v540_v27 = vrot.slane %v536_v26, 4 }
  0xa2   : > { %v547_v28 = vsel %vm542_vm2, %v536_v26, %v540_v27 }
  0xa3   : > { %555 = vst [vmem:[#allocation3 + $0x8c] sm:$0xf] %v547_v28 }
  0xa5   : > { %v606_v29 = vpop.permute.xlu1 %605 }
  0xa6   : > { %v610_v31 = vrot.slane %v606_v29, 4 }
  0xa7   : > { %v602_v34 = vpop.permute.xlu0 %601  ;;  %v1471_v35 = vpop.permute.xlu2 %498 }
  0xa8   : > { %v615_v32 = vsel %vm400_vm0, %v609_v30, %v610_v31  ;;  %v617_v33 = vsel %vm612_vm3, %v606_v29, %v610_v31  ;;  %v608_v38 = vrot.slane %v602_v34, 4  ;;  %v504_v29 = vrot.slane %v1471_v35, 4 }
  0xa9   : > { %v616_v37 = vsel %vm612_vm3, %v604_v24, %v615_v32  ;;  %625 = vst [vmem:[#allocation3 + $0xbc] sm:$0xf] %v617_v33 }
  0xaa   : > { %624 = vst [vmem:[#allocation3 + $0xb4] sm:$0xff] %v616_v37  ;;  %v611_v39 = vsel %vm400_vm0, %v607_v36, %v608_v38  ;;  %v614_v40 = vsel %vm612_vm3, %v602_v34, %v608_v38 }
  0xab   : > { %v613_v41 = vsel %vm612_vm3, %v600_v25, %v611_v39  ;;  %623 = vst [vmem:[#allocation3 + $0xb0] sm:$0xf] %v614_v40 }
  0xac   : > { %622 = vst [vmem:[#allocation3 + $0xa8] sm:$0xff] %v613_v41 }
  0xad   : > { %v571_v42 = vpop.permute.xlu1 %570 }
  0xae   : > { %v575_v43 = vrot.slane %v571_v42, 4 }
  0xaf   : > { %v569_v45 = vpop.permute.xlu0 %568  ;;  %v1475_v46 = vpop.permute.xlu2 %636 }
  0xb0   : > { %v582_v44 = vsel %vm577_vm1, %v571_v42, %v575_v43  ;;  %v574_v47 = vrot.slane %v569_v45, 4  ;;  %v643_v48 = vrot.slane %v1475_v46, 4 }
  0xb1   : > { %590 = vst [vmem:[#allocation3 + $0xa4] sm:$0xf] %v582_v44  ;;  %v1264_v49 = vld [vmem:[#allocation3 + $0xb0] sm:$0xf0]  ;;  %v1215_v50 = vld [vmem:[#allocation3 + $0xb4] sm:$0xf0] }
  0xb2   : > { %v580_v51 = vsel %vm400_vm0, %v574_v47, %v575_v43  ;;  %v649_v52 = vsel %vm647_vm4, %v1475_v46, %v643_v48 }
  0xb3   : > { %v581_v53 = vsel %vm577_vm1, %v569_v45, %v580_v51  ;;  %v1213_v54 = vld [vmem:[#allocation3 + $0xa8] sm:$0xf]  ;;  %v1263_v55 = vld [vmem:[#allocation3 + $0xac] sm:$0xf]  ;;  %658 = vst [vmem:[#allocation3 + $0xc8] sm:$0xf] %v649_v52 }
  0xb4   : > { %589 = vst [vmem:[#allocation3 + $0x9c] sm:$0xff] %v581_v53  ;;  %v1214_v56 = vor.u32 %v1264_v49, %v1213_v54  ;;  %v1218_v57 = vor.u32 %v1263_v55, %v1215_v50 }
  0xb5   : > { %v534_v58 = vpop.permute.xlu1 %533 }
  0xb6   : > { %v539_v59 = vrot.slane %v534_v58, 4  ;;  %868 = vmatpush.bf16.msra.mxu0 %v1214_v56  ;;  %896 = vmatpush.bf16.msra.mxu2 %v1218_v57  ;;  %v373_v57 = vld [vmem:[#allocation2 + $0x8] sm:$0xf] }
  0xb7   : > { %v532_v61 = vpop.permute.xlu0 %531  ;;  %v1485_v63 = vpop.permute.xlu2 %459  ;;  %377 = vst [vmem:[#allocation3 + $0x8] sm:$0xf] %v373_v57 }
  0xb8   : > { %v545_v62 = vsel %vm400_vm0, %v539_v59, %v540_v27  ;;  %v538_v0 = vrot.slane %v532_v61, 4  ;;  %v467_v56 = vrot.slane %v1485_v63, 4 }
  0xb9   : > { %v546_v1 = vsel %vm542_vm2, %v534_v58, %v545_v62  ;;  %v375_v58 = vld [vmem:[#allocation2 + $0x20] sm:$0xf] }
  0xba   : > { %554 = vst [vmem:[#allocation3 + $0x84] sm:$0xff] %v546_v1  ;;  %v541_v2 = vsel %vm400_vm0, %v537_v60, %v538_v0  ;;  %v544_v3 = vsel %vm542_vm2, %v532_v61, %v538_v0  ;;  %v1221_v0 = vld [vmem:[#allocation3 + $0xb0] sm:$0xf]  ;;  %v1265_v1 = vld [vmem:[#allocation3 + $0xb8] sm:$0xf0] }
  0xbb   : > { %v543_v6 = vsel %vm542_vm2, %v530_v23, %v541_v2  ;;  %553 = vst [vmem:[#allocation3 + $0x80] sm:$0xf] %v544_v3  ;;  %v1261_v7 = vld [vmem:[#allocation3 + $0x98] sm:$0xf0]  ;;  %v1203_v8 = vld [vmem:[#allocation3 + $0x9c] sm:$0xf0] }
  0xbc   : > { %552 = vst [vmem:[#allocation3 + $0x78] sm:$0xff] %v543_v6  ;;  %v1202_v9 = vor.u32 %v1261_v7, %v1201_v4  ;;  %v1206_v10 = vor.u32 %v1260_v5, %v1203_v8  ;;  %v1240_v2 = vld [vmem:[%s1592_s2 + $0x4] sm:$0xf]  ;;  %v1123_v3 = vld [vmem:[%s1592_s2 + $0x8] sm:$0xf0] }
  0xbd   : > { %v497_v11 = vpop.permute.xlu1 %496  ;;  %379 = vst [vmem:[#allocation3 + $0x14] sm:$0xf] %v375_v58 }
  0xbe   : > { %v503_v12 = vrot.slane %v497_v11, 4  ;;  %869 = vmatpush.bf16.msra.mxu0 %v1202_v9  ;;  %897 = vmatpush.bf16.msra.mxu2 %v1206_v10 }
  0xbf   : > { %v495_v14 = vpop.permute.xlu0 %494  ;;  %v466_v15 = vpop.permute.xlu2 %465 }
  0xc0   : > { %v509_v13 = vsel %vm507_vm5, %v497_v11, %v503_v12  ;;  %v502_v16 = vrot.slane %v495_v14, 4  ;;  %v470_v17 = vrot.slane %v466_v15, 4 }
  0xc1   : > { %518 = vst [vmem:[#allocation3 + $0x68] sm:$0xf] %v509_v13  ;;  %v1258_v18 = vld [vmem:[#allocation3 + $0x80] sm:$0xf0]  ;;  %v1191_v19 = vld [vmem:[#allocation3 + $0x84] sm:$0xf0] }
  0xc2   : > { %v506_v20 = vsel %vm400_vm0, %v502_v16, %v503_v12  ;;  %v477_v21 = vsel %vm472_vm6, %v466_v15, %v470_v17  ;;  %v1233_v15 = vld [vmem:[#allocation3 + $0xc8] sm:$0xf] }
  0xc3   : > { %v508_v22 = vsel %vm507_vm5, %v495_v14, %v506_v20  ;;  %v1189_v23 = vld [vmem:[#allocation3 + $0x78] sm:$0xf]  ;;  %v1257_v24 = vld [vmem:[#allocation3 + $0x7c] sm:$0xf]  ;;  %485 = vst [vmem:[#allocation3 + $0x5c] sm:$0xf] %v477_v21 }
  0xc4   : > { %517 = vst [vmem:[#allocation3 + $0x60] sm:$0xff] %v508_v22  ;;  %v1190_v25 = vor.u32 %v1258_v18, %v1189_v23  ;;  %v1194_v26 = vor.u32 %v1257_v24, %v1191_v19  ;;  %v1529_v19 = vor.u32 %v1240_v2, %v1123_v3  ;;  %v1262_v20 = vld [vmem:[#allocation3 + $0xa0] sm:$0xf0]  ;;  %v1209_v23 = vld [vmem:[#allocation3 + $0x98] sm:$0xf] }
  0xc5   : > { %v635_v27 = vpop.permute.xlu1 %634  ;;  %v1210_v24 = vor.u32 %v1262_v20, %v1209_v23  ;;  %v1121_v23 = vld [vmem:[%s1592_s2] sm:$0xf] }
  0xc6   : > { %v642_v28 = vrot.slane %v635_v27, 4  ;;  %870 = vmatpush.bf16.msra.mxu0 %v1190_v25  ;;  %898 = vmatpush.bf16.msra.mxu2 %v1194_v26 }
  0xc7   : > { %v501_v31 = vpop.permute.xlu0 %500  ;;  %v1499_v32 = vpop.permute.xlu2 %428 }
  0xc8   : > { %v646_v30 = vsel %vm400_vm0, %v642_v28, %v643_v48  ;;  %v505_v34 = vrot.slane %v501_v31, 4  ;;  %v1197_v28 = vld [vmem:[#allocation3 + $0x80] sm:$0xf] }
  0xc9   : > { %v648_v33 = vsel %vm647_vm4, %v635_v27, %v646_v30 }
  0xca   : > { %657 = vst [vmem:[#allocation3 + $0xc0] sm:$0xff] %v648_v33  ;;  %v510_v36 = vsel %vm400_vm0, %v504_v29, %v505_v34  ;;  %v512_v37 = vsel %vm507_vm5, %v501_v31, %v505_v34  ;;  %v1259_v29 = vld [vmem:[#allocation3 + $0x88] sm:$0xf0] }
  0xcb   : > { %v511_v38 = vsel %vm507_vm5, %v1471_v35, %v510_v36  ;;  %520 = vst [vmem:[#allocation3 + $0x74] sm:$0xf] %v512_v37  ;;  %v1177_v47 = vld [vmem:[#allocation3 + $0x60] sm:$0xf]  ;;  %v1254_v48 = vld [vmem:[#allocation3 + $0x64] sm:$0xf] }
  0xcc   : > { %519 = vst [vmem:[#allocation3 + $0x6c] sm:$0xff] %v511_v38  ;;  %v1198_v38 = vor.u32 %v1259_v29, %v1197_v28 }
  0xcd   : > { %v641_v39 = vpop.permute.xlu1 %640 }
  0xce   : > { %v645_v40 = vrot.slane %v641_v39, 4 }
  0xcf   : > { %v639_v42 = vpop.permute.xlu0 %638  ;;  %v1507_v43 = vpop.permute.xlu2 %390 }
  0xd0   : > { %v652_v41 = vsel %vm647_vm4, %v641_v39, %v645_v40  ;;  %v644_v44 = vrot.slane %v639_v42, 4  ;;  %v397_v45 = vrot.slane %v1507_v43, 4 }
  0xd1   : > { %660 = vst [vmem:[#allocation3 + $0xd4] sm:$0xf] %v652_v41  ;;  %v1225_v6 = vld [vmem:[#allocation3 + $0xc0] sm:$0xf]  ;;  %v1266_v7 = vld [vmem:[#allocation3 + $0xc4] sm:$0xf] }
  0xd2   : > { %v650_v46 = vsel %vm400_vm0, %v644_v44, %v645_v40  ;;  %v404_v35 = vsel %vm402_vm7, %v1507_v43, %v397_v45  ;;  %v700_v40 = vld [vmem:[%s1593_s3 + $0x8] sm:$0xff]  ;;  %v434_v41 = vrot.slane %v1499_v32, 4  ;;  %v699_v44 = vld [vmem:[%s1593_s3] sm:$0xff] }
  0xd3   : > { %v651_v49 = vsel %vm647_vm4, %v639_v42, %v650_v46  ;;  %v1255_v50 = vld [vmem:[#allocation3 + $0x68] sm:$0xf0]  ;;  %v1179_v51 = vld [vmem:[#allocation3 + $0x6c] sm:$0xf0]  ;;  %413 = vst [vmem:[#allocation3 + $0x20] sm:$0xf] %v404_v35 }
  0xd4   : > { %659 = vst [vmem:[#allocation3 + $0xcc] sm:$0xff] %v651_v49  ;;  %v1178_v52 = vor.u32 %v1255_v50, %v1177_v47  ;;  %v1182_v53 = vor.u32 %v1254_v48, %v1179_v51  ;;  %v1256_v42 = vld [vmem:[#allocation3 + $0x70] sm:$0xf0]  ;;  %v1373_v48 = vmov 0   ;;  %v1185_v50 = vld [vmem:[#allocation3 + $0x68] sm:$0xf] }
  0xd5   : > { %v464_v54 = vpop.permute.xlu1 %463  ;;  %1324 = vset.pattern.permute.xlu0 %v1373_v48  ;;  %1323 = vset.pattern.permute.xlu2 %v1373_v48  ;;  %v1186_v51 = vor.u32 %v1256_v42, %v1185_v50 }
  0xd6   : > { %v469_v55 = vrot.slane %v464_v54, 4  ;;  %871 = vmatpush.bf16.msra.mxu0 %v1178_v52  ;;  %899 = vmatpush.bf16.msra.mxu2 %v1182_v53 }
  0xd7   : > { %v462_v59 = vpop.permute.xlu0 %461  ;;  %708 = vperm.xlu0 %1324, %v700_v40   ;;  %703 = vperm.xlu2 %1323, %v699_v44  }
  0xd8   : > { %v475_v60 = vsel %vm400_vm0, %v469_v55, %v470_v17  ;;  %v468_v61 = vrot.slane %v462_v59, 4  ;;  %v1268_v8 = vld [vmem:[#allocation3 + $0xd0] sm:$0xf0]  ;;  %v1222_v17 = vor.u32 %v1265_v1, %v1221_v0  ;;  %v1253_v55 = vld [vmem:[#allocation3 + $0x58] sm:$0xf0] }
  0xd9   : > { %v476_v62 = vsel %vm472_vm6, %v464_v54, %v475_v60  ;;  %v1234_v18 = vor.u32 %v1268_v8, %v1233_v15 }
  0xda   : > { %484 = vst [vmem:[#allocation3 + $0x54] sm:$0xff] %v476_v62  ;;  %v471_v4 = vsel %vm400_vm0, %v467_v56, %v468_v61  ;;  %v474_v5 = vsel %vm472_vm6, %v462_v59, %v468_v61  ;;  %v1149_v8 = vld [vmem:[#allocation3 + $0x20] sm:$0xf] }
  0xdb   : > { %v473_v9 = vsel %vm472_vm6, %v1485_v63, %v471_v4  ;;  %483 = vst [vmem:[#allocation3 + $0x50] sm:$0xf] %v474_v5  ;;  %v1267_v10 = vld [vmem:[#allocation3 + $0xc8] sm:$0xf0]  ;;  %v1227_v11 = vld [vmem:[#allocation3 + $0xcc] sm:$0xf0] }
  0xdc   : > { %482 = vst [vmem:[#allocation3 + $0x48] sm:$0xff] %v473_v9  ;;  %v1226_v12 = vor.u32 %v1267_v10, %v1225_v6  ;;  %v1230_v13 = vor.u32 %v1266_v7, %v1227_v11  ;;  %v1137_v11 = vld [vmem:[#allocation3 + $0x8] sm:$0xf] }
  0xdd   : > { %v427_v14 = vpop.permute.xlu1 %426 }
  0xde   : > { %v433_v16 = vrot.slane %v427_v14, 4  ;;  %889 = vmatpush.bf16.msra.mxu1 %v1226_v12  ;;  %917 = vmatpush.bf16.msra.mxu3 %v1230_v13  ;;  %v1244_v12 = vld [vmem:[#allocation3 + $0x10] sm:$0xf0]  ;;  %v1129_v13 = vld [vmem:[#allocation3] sm:$0xf] }
  0xdf   : > { %v425_v21 = vpop.permute.xlu0 %424 }
  0xe0   : > { %v439_v63 = vsel %vm437_vm8, %v427_v14, %v433_v16  ;;  %v432_v22 = vrot.slane %v425_v21, 4  ;;  %v1243_v14 = vld [vmem:[#allocation3 + $0x8] sm:$0xf0] }
  0xe1   : > { %448 = vst [vmem:[#allocation3 + $0x38] sm:$0xf] %v439_v63  ;;  %v1252_v25 = vld [vmem:[#allocation3 + $0x50] sm:$0xf0]  ;;  %v1167_v26 = vld [vmem:[#allocation3 + $0x54] sm:$0xf0]  ;;  %1236 = vmatmul.msk.bf16.vlgmr.msra.gmra.mxu3 %vm864_vm9, %v1529_v19  ;;  %1235 = vmatmul.msk.bf16.vlgmr.msra.gmra.mxu1 %vm864_vm9, %v1529_v19  ;;  %v1138_v63 = vor.u32 %v1244_v12, %v1137_v11 }
  0xe2   : > { %924 = vmatpush.bf16.msrb.mxu1 %v1222_v17  ;;  %945 = vmatpush.bf16.msrb.mxu3 %v1234_v18  ;;  %v436_v27 = vsel %vm400_vm0, %v432_v22, %v433_v16  ;;  %v1173_v54 = vld [vmem:[#allocation3 + $0x50] sm:$0xf]  ;;  %v1242_v16 = vld [vmem:[#allocation3 + $0x4] sm:$0xf] }
  0xe3   : > { %v438_v30 = vsel %vm437_vm8, %v425_v21, %v436_v27  ;;  %v1165_v31 = vld [vmem:[#allocation3 + $0x48] sm:$0xf]  ;;  %v1251_v33 = vld [vmem:[#allocation3 + $0x4c] sm:$0xf]  ;;  %v1174_v56 = vor.u32 %v1253_v55, %v1173_v54  ;;  %v1131_v17 = vld [vmem:[#allocation3 + $0xc] sm:$0xf0] }
  0xe4   : > { %447 = vst [vmem:[#allocation3 + $0x30] sm:$0xff] %v438_v30  ;;  %v1166_v34 = vor.u32 %v1252_v25, %v1165_v31  ;;  %v1170_v36 = vor.u32 %v1251_v33, %v1167_v26  ;;  %v1130_v25 = vor.u32 %v1243_v14, %v1129_v13  ;;  %v1134_v26 = vor.u32 %v1242_v16, %v1131_v17 }
  0xe5   : > { %v389_v37 = vpop.permute.xlu1 %388 }
  0xe6   : > { %925 = vmatpush.bf16.msrb.mxu1 %v1210_v24  ;;  %v396_v39 = vrot.slane %v389_v37, 4  ;;  %872 = vmatpush.bf16.msra.mxu0 %v1166_v34  ;;  %v1241_v24 = vld [vmem:[%s1592_s2 + $0x4] sm:$0xf0] }
  0xe7   : > { %900 = vmatpush.bf16.msra.mxu2 %v1170_v36  ;;  %v431_v46 = vpop.permute.xlu0 %430  ;;  %v1122_v27 = vor.u32 %v1241_v24, %v1121_v23 }
  0xe8   : > { %v401_v47 = vsel %vm400_vm0, %v396_v39, %v397_v45  ;;  %v435_v35 = vrot.slane %v431_v46, 4  ;;  %v1161_v62 = vld [vmem:[#allocation3 + $0x38] sm:$0xf] }
  0xe9   : > { %v403_v49 = vsel %vm402_vm7, %v389_v37, %v401_v47 }
  0xea   : > { %926 = vmatpush.bf16.msrb.mxu1 %v1198_v38  ;;  %412 = vst [vmem:[#allocation3 + $0x18] sm:$0xff] %v403_v49  ;;  %v440_v52 = vsel %vm400_vm0, %v434_v41, %v435_v35  ;;  %v442_v53 = vsel %vm437_vm8, %v431_v46, %v435_v35  ;;  %v959_v41 = vstv %s952_s27 }
  0xeb   : > { %v441_v43 = vsel %vm437_vm8, %v1499_v32, %v440_v52  ;;  %450 = vst [vmem:[#allocation3 + $0x44] sm:$0xf] %v442_v53  ;;  %v1153_v32 = vld [vmem:[#allocation3 + $0x30] sm:$0xf]  ;;  %v1248_v4 = vld [vmem:[#allocation3 + $0x34] sm:$0xf] }
  0xec   : > { %449 = vst [vmem:[#allocation3 + $0x3c] sm:$0xff] %v441_v43 }
  0xed   : > { %v395_v45 = vpop.permute.xlu1 %394 }
  0xee   : > { %927 = vmatpush.bf16.msrb.mxu1 %v1186_v51  ;;  %v399_v57 = vrot.slane %v395_v45, 4 }
  0xef   : > { %v393_v58 = vpop.permute.xlu0 %392 }
  0xf0   : > { %v407_v59 = vsel %vm402_vm7, %v395_v45, %v399_v57  ;;  %v398_v60 = vrot.slane %v393_v58, 4 }
  0xf1   : > { %415 = vst [vmem:[#allocation3 + $0x2c] sm:$0xf] %v407_v59  ;;  %1237 = vmatmul.msk.bf16.vlgmr.msrb.gmra.mxu3 %vm864_vm9, %v1529_v19  ;;  %v1141_v15 = vld [vmem:[#allocation3 + $0x18] sm:$0xf]  ;;  %v1245_v19 = vld [vmem:[#allocation3 + $0x1c] sm:$0xf] }
  0xf2   : > { %928 = vmatpush.bf16.msrb.mxu1 %v1174_v56  ;;  %v405_v61 = vsel %vm400_vm0, %v398_v60, %v399_v57  ;;  %v1250_v0 = vld [vmem:[#allocation3 + $0x40] sm:$0xf0] }
  0xf3   : > { %v406_v1 = vsel %vm402_vm7, %v393_v58, %v405_v61  ;;  %v1162_v2 = vor.u32 %v1250_v0, %v1161_v62  ;;  %v1249_v3 = vld [vmem:[#allocation3 + $0x38] sm:$0xf0]  ;;  %v1155_v5 = vld [vmem:[#allocation3 + $0x3c] sm:$0xf0] }
  0xf4   : > { %414 = vst [vmem:[#allocation3 + $0x24] sm:$0xff] %v406_v1  ;;  %v1154_v6 = vor.u32 %v1249_v3, %v1153_v32  ;;  %v1158_v7 = vor.u32 %v1248_v4, %v1155_v5 }
  0xf6   : > { %929 = vmatpush.bf16.msrb.mxu1 %v1162_v2  ;;  %873 = vmatpush.bf16.msra.mxu0 %v1154_v6 }
  0xf7   : > { %901 = vmatpush.bf16.msra.mxu2 %v1158_v7 }
  0xf8   : > { %v1247_v9 = vld [vmem:[#allocation3 + $0x28] sm:$0xf0] }
  0xf9   : > { %v1150_v10 = vor.u32 %v1247_v9, %v1149_v8 }
  0xfb   : > { %930 = vmatpush.bf16.msrb.mxu1 %v1150_v10  ;;  %v1246_v18 = vld [vmem:[#allocation3 + $0x20] sm:$0xf0]  ;;  %v1143_v20 = vld [vmem:[#allocation3 + $0x24] sm:$0xf0] }
  0xfc   : > { %v1142_v21 = vor.u32 %v1246_v18, %v1141_v15  ;;  %v1146_v22 = vor.u32 %v1245_v19, %v1143_v20 }
  0xfe   : > { %874 = vmatpush.bf16.msra.mxu0 %v1142_v21  ;;  %902 = vmatpush.bf16.msra.mxu2 %v1146_v22 }
  0xff   : > { %931 = vmatpush.bf16.msrb.mxu1 %v1138_v63 }
 0x102   : > { %875 = vmatpush.bf16.msra.mxu0 %v1130_v25  ;;  %903 = vmatpush.bf16.msra.mxu2 %v1134_v26 }
 0x103   : > { %932 = vmatmul.bf16.vlgmr.msrb.gmra.mxu1 %v1122_v27 }
 0x105   : > { %876 = vmatmul.bf16.vlgmr.msra.gmra.mxu0 %v1122_v27  ;;  %904 = vmatmul.bf16.vlgmr.msra.gmra.mxu2 %v1122_v27 }
 0x131   : > { %v704_v36 = vpop.permute.xlu2 %703 }
 0x149   : > { %v709_v44 = vpop.permute.xlu0 %708 }
 0x15e   : > { %v891_v29 = vpop.f32.mrf.mxu1 }
 0x164   : > { %v919_v28 = vpop.f32.mrf.mxu3 }
 0x166   : > { %v893_v31 = vpop.f32.mrf.mxu1 }
 0x16c   : > { %v921_v30 = vpop.f32.mrf.mxu3 }
 0x174   : > { %v947_v33 = vpop.f32.mrf.mxu3 }
 0x17c   : > { %v949_v48 = vpop.f32.mrf.mxu3 }
 0x180   : > { %v933_v34 = vpop.f32.mrf.mxu1 }
 0x181   : > { %v934_v37 = vadd.f32 %v933_v34, %v704_v36 }
 0x182   : > { %v877_v38 = vpop.f32.mrf.mxu0 }
 0x183   : > { %v948_v39 = vadd.f32 %v947_v33, %v934_v37  ;;  %v878_v40 = vadd.f32 %v877_v38, %v704_v36 }
 0x185   : > { %vm955_vm10 = vcmp.ge.f32.partialorder %v948_v39, 0.0  ;;  %v962_v42 = vmul.f32 %v959_v41, %v948_v39  ;;  %v892_v47 = vadd.f32 %v891_v29, %v878_v40 }
 0x187   : > { %v968_v46 = vsel %vm955_vm10, %v948_v39, %v962_v42  ;;  %v960_v54 = vmul.f32 %v959_v41, %v892_v47  ;;  %vm953_vm11 = vcmp.ge.f32.partialorder %v892_v47, 0.0 }
 0x188   : > { %v973_v35 = vpack.c.bf16 %v968_v46, %v968_v46  ;;  %v905_v49 = vpop.f32.mrf.mxu2  ;;  %v935_v50 = vpop.f32.mrf.mxu1 }
 0x189   : > { %v906_v51 = vadd.f32 %v905_v49, %v704_v36  ;;  %v936_v52 = vadd.f32 %v935_v50, %v709_v44  ;;  %v966_v58 = vsel %vm953_vm11, %v892_v47, %v960_v54 }
 0x18a   : > { %977 = vst [vmem:[%s1569_s6 + $0x8] sm:$0xf] %v973_v35  ;;  %v879_v53 = vpop.f32.mrf.mxu0 }
 0x18b   : > { %v920_v55 = vadd.f32 %v919_v28, %v906_v51  ;;  %v880_v43 = vadd.f32 %v879_v53, %v709_v44  ;;  %v950_v45 = vadd.f32 %v949_v48, %v936_v52 }
 0x18d   : > { %vm954_vm12 = vcmp.ge.f32.partialorder %v920_v55, 0.0  ;;  %v961_v56 = vmul.f32 %v959_v41, %v920_v55  ;;  %vm958_vm13 = vcmp.ge.f32.partialorder %v950_v45, 0.0  ;;  %v965_v57 = vmul.f32 %v959_v41, %v950_v45 }
 0x18e   : > { %v894_v60 = vadd.f32 %v893_v31, %v880_v43 }
 0x18f   : > { %v967_v59 = vsel %vm954_vm12, %v920_v55, %v961_v56  ;;  %v971_v62 = vsel %vm958_vm13, %v950_v45, %v965_v57 }
 0x190   : > { %v972_v61 = vpack.c.bf16 %v967_v59, %v966_v58  ;;  %v907_v0 = vpop.f32.mrf.mxu2  ;;  %v975_v32 = vpack.c.bf16 %v971_v62, %v971_v62  ;;  %v963_v2 = vmul.f32 %v959_v41, %v894_v60  ;;  %vm956_vm14 = vcmp.ge.f32.partialorder %v894_v60, 0.0 }
 0x191   : > { %v908_v1 = vadd.f32 %v907_v0, %v709_v44 }
 0x192   : > { %976 = vst [vmem:[%s1569_s6] sm:$0xff] %v972_v61  ;;  %v969_v5 = vsel %vm956_vm14, %v894_v60, %v963_v2 }
 0x193   : > { %979 = vst [vmem:[%s1569_s6 + $0x14] sm:$0xf] %v975_v32  ;;  %v922_v3 = vadd.f32 %v921_v30, %v908_v1 }
 0x195   : > { %vm957_vm15 = vcmp.ge.f32.partialorder %v922_v3, 0.0  ;;  %v964_v4 = vmul.f32 %v959_v41, %v922_v3 }
 0x197   : > { %v970_v6 = vsel %vm957_vm15, %v922_v3, %v964_v4 }
 0x198   : > { %v974_v7 = vpack.c.bf16 %v970_v6, %v969_v5 }
 0x19a   : > { %978 = vst [vmem:[%s1569_s6 + $0xc] sm:$0xff] %v974_v7 }
 0x19b PF: > { %s16_s24 = sadd.s32 1, %s1363_s24   ;;  %s1597_s20 = smov %s1351_s21 }
 0x19c   : > { %p13_p10 = scmp.ge.s32.totalorder %s16_s24, 4   ;;  %s1598_s21 = smov %s1446_s28 }
 0x19d   : > { %s1599_s22 = smov %s1359_s23  ;;  %s1600_s23 = smov %s1602_s4 }
 0x19e   :  { %15 = sbr.rel (!%p13_p10) target bundleno = 5 (0x5), region = 147 }

</bundles_post_ra>
